<compile_context>
chip_gen: v6e
topology: v6e:2x2x1
jax: 0.10.0
libtpu: 0.0.40
codegen_flags: <defaults>
</compile_context>

<pallas_src>
import functools

import jax
import jax.numpy as jnp
from jax.experimental import pallas as pl
from jax.experimental.pallas import tpu as pltpu


# ----------------------------------------------------------------------------
# Small helpers
# ----------------------------------------------------------------------------
def _round8(v):
    return ((v + 7) // 8) * 8


def _lane_pad(v):
    return ((v + 127) // 128) * 128


def _choose_block_b(B, max_block_b, target_steps=4):
    """Sublane-aligned batch tile.

    Large tiles amortize the ~0.35us per-grid-step overhead; for large batches
    we keep at least `target_steps` grid steps so the "parallel" batch axis can
    be split across v7x's two TensorCores (v5e/v6e have a single TC).
    """
    if B <= 8:
        return B                      # block dim == full array dim is always legal
    bb = min(_round8(-(-B // target_steps)), max(8, (max_block_b // 8) * 8))
    return bb if bb < B else B


def _vmem_limit_bytes(tile_bytes, resident_bytes=0):
    # Double-buffered pipeline tiles + resident constants + headroom, clamped so
    # it stays above v5e's 16 MiB default scoped limit and within v7x's 64 MiB
    # physical VMEM.
    need = 2 * tile_bytes + resident_bytes + (4 << 20)
    return int(min(max(need, 32 << 20), 64 << 20))


# ----------------------------------------------------------------------------
# Kernel A: SPDUnVectorize -- packed upper-tri vectors -> flat symmetric mats
# ----------------------------------------------------------------------------
def _unvectorize_kernel(x_ref, g_ref, o_ref):
    # x_ref: (bb, L) packed rows; g_ref: (L, n*n) 0/1 scatter matrix;
    # o_ref: (bb, n*n) flattened symmetric matrices (lane-dense output slab).
    o_ref[...] = jnp.dot(
        x_ref[...], g_ref[...], preferred_element_type=jnp.float32
    ).astype(o_ref.dtype)


def _make_unvec_matrix(n, dtype=jnp.float32):
    """G[l, i*n + j] = 1 iff packed upper-tri index of (min(i,j), max(i,j)) == l."""
    L = n * (n + 1) // 2
    ii, jj = jnp.meshgrid(jnp.arange(n), jnp.arange(n), indexing="ij")
    r = jnp.minimum(ii, jj)
    c = jnp.maximum(ii, jj)
    tri_idx = (r * n - (r * (r - 1)) // 2 + (c - r)).reshape(-1)        # (n*n,)
    return (tri_idx[None, :] == jnp.arange(L)[:, None]).astype(dtype)   # (L, n*n)


def spd_unvectorize(x_vec, n, *, max_block_b=4096):
    """(B, n(n+1)/2) packed upper-triangular -> (B, n, n) symmetric."""
    B, L = x_vec.shape
    assert L == n * (n + 1) // 2
    nn = n * n
    block_b = _choose_block_b(B, max_block_b)
    g = _make_unvec_matrix(n, x_vec.dtype)
    # NOTE: L (=136 for n=16) is left unpadded to avoid an extra HBM copy of x;
    # the 8-lane tail only costs a masked load on the LHS tile.
    tile_bytes = (block_b * _lane_pad(L) * 4
                  + block_b * _lane_pad(nn) * x_vec.dtype.itemsize)
    resident = 2 * _round8(L) * _lane_pad(nn) * 4
    out_flat = pl.pallas_call(
        _unvectorize_kernel,
        out_shape=jax.ShapeDtypeStruct((B, nn), x_vec.dtype),
        grid_spec=pltpu.PrefetchScalarGridSpec(
            num_scalar_prefetch=0,
            grid=(pl.cdiv(B, block_b),),         # no batch-padding HBM copy
            in_specs=[
                pl.BlockSpec((block_b, L), lambda b: (b, 0)),
                pl.BlockSpec((L, nn), lambda b: (0, 0)),     # resident constant
            ],
            out_specs=pl.BlockSpec((block_b, nn), lambda b: (b, 0)),
        ),
        compiler_params=pltpu.CompilerParams(
            dimension_semantics=("parallel",),
            vmem_limit_bytes=_vmem_limit_bytes(tile_bytes, resident),
        ),
        cost_estimate=pl.CostEstimate(
            flops=2 * B * L * nn,
            transcendentals=0,
            bytes_accessed=(B * L + L * nn + B * nn) * 4,
        ),
    )(x_vec, g)
    return out_flat.reshape(B, n, n)


# ----------------------------------------------------------------------------
# Kernel B: reconstruction  out[b] = U[b] @ diag(exp(|w[b]|)) @ U[b]^T
# (matches torch's u.mm(s.exp().diag()).mm(u.t()) with s = singular values)
# ----------------------------------------------------------------------------
def _untangent_dense_kernel(u_ref, w_ref, o_ref, *, n):
    # Lane-dense blocks: u_ref (bb, n*n), w_ref (bb, n), o_ref (bb, n*n).
    bb = u_ref.shape[0]
    u = u_ref[...].reshape(bb, n, n)
    a = u * jnp.exp(0.5 * jnp.abs(w_ref[...]))[:, None, :]   # A = U diag(e^{|w|/2})
    out = jnp.einsum("bij,bkj->bik", a, a, preferred_element_type=jnp.float32)
    o_ref[...] = out.reshape(bb, n * n).astype(o_ref.dtype)


def _untangent_3d_kernel(u_ref, w_ref, o_ref):
    # Fallback layout: u_ref (bb, n, n), w_ref (bb, n), o_ref (bb, n, n).
    a = u_ref[...] * jnp.exp(0.5 * jnp.abs(w_ref[...]))[:, None, :]
    o_ref[...] = jnp.einsum(
        "bij,bkj->bik", a, a, preferred_element_type=jnp.float32
    ).astype(o_ref.dtype)


def _reconstruct_call(u, w, *, block_b, out_dtype, lane_dense):
    B, n, _ = u.shape
    nn = n * n
    osize = jnp.dtype(out_dtype).itemsize
    w_tile = block_b * _lane_pad(n) * 4
    if lane_dense:
        kernel = functools.partial(_untangent_dense_kernel, n=n)
        u_in = u.reshape(B, nn)                   # free row-major layout plumbing
        u_spec = pl.BlockSpec((block_b, nn), lambda b: (b, 0))
        u_tile = block_b * _lane_pad(nn) * 4
        out_shape = jax.ShapeDtypeStruct((B, nn), out_dtype)
        out_spec = pl.BlockSpec((block_b, nn), lambda b: (b, 0))
        out_tile = block_b * _lane_pad(nn) * osize
    else:
        kernel = _untangent_3d_kernel
        u_in = u
        u_spec = pl.BlockSpec((block_b, n, n), lambda b: (b, 0, 0))
        u_tile = block_b * _round8(n) * _lane_pad(n) * 4          # 8x lane padding
        out_shape = jax.ShapeDtypeStruct((B, n, n), out_dtype)
        out_spec = pl.BlockSpec((block_b, n, n), lambda b: (b, 0, 0))
        out_tile = block_b * _round8(n) * _lane_pad(n) * osize
    out = pl.pallas_call(
        kernel,
        out_shape=out_shape,
        grid_spec=pltpu.PrefetchScalarGridSpec(
            num_scalar_prefetch=0,
            grid=(pl.cdiv(B, block_b),),          # no batch-padding HBM copy
            in_specs=[u_spec, pl.BlockSpec((block_b, n), lambda b: (b, 0))],
            out_specs=out_spec,
        ),
        compiler_params=pltpu.CompilerParams(
            dimension_semantics=("parallel",),
            vmem_limit_bytes=_vmem_limit_bytes(u_tile + w_tile + out_tile),
        ),
        cost_estimate=pl.CostEstimate(
            flops=2 * B * n * nn + 3 * B * nn,
            transcendentals=B * n,
            bytes_accessed=(B * nn + B * n) * 4 + B * nn * osize,
        ),
    )(u_in, w)
    return out.reshape(B, n, n)


_LANE_DENSE_RECON = True  # flipped off if Mosaic rejects the in-kernel relayout


def spd_untangent_reconstruct(u, w, *, max_block_b=1024, out_dtype=None):
    """out[b] = U[b] diag(exp(|w[b]|)) U[b]^T."""
    global _LANE_DENSE_RECON
    B, n, _ = u.shape
    out_dtype = u.dtype if out_dtype is None else jnp.dtype(out_dtype)
    if _LANE_DENSE_RECON:
        try:
            # Preferred: lane-dense (B, n*n) blocks -> dense stores/DMA and 8x
            # smaller VMEM tiles than (block_b, n, n) blocks with n=16.
            return _reconstruct_call(
                u, w, block_b=_choose_block_b(B, max_block_b),
                out_dtype=out_dtype, lane_dense=True)
        except Exception:
            # NOTE: only reachable when called eagerly; under an outer jit the
            # Mosaic lowering runs at XLA-compile time instead.
            _LANE_DENSE_RECON = False
    # TODO(synk): some Mosaic versions cannot lower the in-register
    # (bb, n*n) <-> (bb, n, n) relayout; fall back to the validated 3-D blocks
    # (smaller block_b to budget for the 8x lane padding of the tiles).
    return _reconstruct_call(
        u, w, block_b=_choose_block_b(B, min(max_block_b, 512)),
        out_dtype=out_dtype, lane_dense=False)


# ----------------------------------------------------------------------------
# Full forward: SPDUnTangentSpace(unvectorize=True)
# ----------------------------------------------------------------------------
def spd_untangent_space(x, *, unvectorize=True, out_dtype=None,
                        max_block_b_unvec=4096, max_block_b_recon=1024):
    if unvectorize:
        L = x.shape[1]
        n = int(round((-1.0 + (1.0 + 8.0 * L) ** 0.5) / 2.0))
        sym = spd_unvectorize(x, n, max_block_b=max_block_b_unvec)
    else:
        sym = x
    # TODO(synk): batched symmetric eigendecomposition / SVD has no clean Pallas
    # TPU equivalent; jnp.linalg.eigh is used here (U exp(|w|) U^T equals the
    # torch SVD-based u exp(s) u^T for symmetric input) and dominates runtime.
    w, u = jnp.linalg.eigh(sym)
    return spd_untangent_reconstruct(u, w, max_block_b=max_block_b_recon,
                                     out_dtype=out_dtype)


if __name__ == "__main__":
    def reference(x_vec, n):
        b = x_vec.shape[0]
        iu0, iu1 = jnp.triu_indices(n)
        sym = jnp.zeros((b, n, n), jnp.float32).at[:, iu0, iu1].set(x_vec)
        sym = sym + jnp.transpose(sym, (0, 2, 1))
        sym = sym.at[:, jnp.arange(n), jnp.arange(n)].divide(2.0)
        u_r, s_r, _ = jnp.linalg.svd(sym)
        return jnp.einsum("bij,bj,bkj->bik", u_r, jnp.exp(s_r), u_r)

    n = 16
    L = n * (n + 1) // 2   # 136
    k0, k1 = jax.random.split(jax.random.PRNGKey(0))

    # Case 1: tiny batch (single block per kernel).
    x1 = 0.1 * jax.random.normal(k0, (2, L), dtype=jnp.float32)
    out1 = jax.block_until_ready(spd_untangent_space(x1))
    ref1 = reference(x1, n)
    assert out1.shape == (2, n, n)
    err1 = float(jnp.max(jnp.abs(out1 - ref1)))
    assert jnp.allclose(out1, ref1, atol=1e-3, rtol=1e-3), f"max abs err {err1}"

    # Case 2: ragged batch with a partial tail block (exercises the cdiv grid +
    # masked writeback path that replaced the jnp.pad HBM copy).
    x2 = 0.1 * jax.random.normal(k1, (20, L), dtype=jnp.float32)
    out2 = jax.block_until_ready(
        spd_untangent_space(x2, max_block_b_unvec=8, max_block_b_recon=8))
    ref2 = reference(x2, n)
    err2 = float(jnp.max(jnp.abs(out2 - ref2)))
    assert jnp.allclose(out2, ref2, atol=1e-3, rtol=1e-3), f"max abs err {err2}"

    print("KERNEL_OK")
</pallas_src>

<mosaic_0001>
module attributes {stable_mosaic.version = 11 : i64} {
  func.func @_unvectorize_kernel(%arg0: i32, %arg1: memref<2x136xf32, #tpu.memory_space<vmem>>, %arg2: memref<136x256xf32, #tpu.memory_space<vmem>>, %arg3: memref<2x256xf32, #tpu.memory_space<vmem>>) attributes {dimension_semantics = [#tpu.dimension_semantics<parallel>], iteration_bounds = array<i64: 1>, scalar_prefetch = 0 : i64, scratch_operands = 0 : i64, tpu.core_type = #tpu.core_type<tc>, window_params = [{transform_indices = @transform_0, window_bounds = array<i64: 2, 136>}, {pipeline_mode = #tpu.pipeline_mode<synchronous>, transform_indices = @transform_1, window_bounds = array<i64: 136, 256>}, {transform_indices = @transform_2, window_bounds = array<i64: 2, 256>}]} {
    %c0 = arith.constant 0 : index
    %c0_0 = arith.constant 0 : index
    %0 = vector.load %arg1[%c0, %c0_0] : memref<2x136xf32, #tpu.memory_space<vmem>>, vector<2x136xf32>
    %c0_1 = arith.constant 0 : index
    %c0_2 = arith.constant 0 : index
    %1 = vector.load %arg2[%c0_1, %c0_2] : memref<136x256xf32, #tpu.memory_space<vmem>>, vector<136x256xf32>
    %cst = arith.constant dense<0.000000e+00> : vector<2x256xf32>
    %2 = tpu.matmul %0, %1, %cst {dimension_numbers = #tpu.dot_dimension_numbers<[1], [0], [0], [1], [0, 0, 1, 1], [], []>} : vector<2x136xf32>, vector<136x256xf32>, vector<2x256xf32> -> vector<2x256xf32>
    %c0_3 = arith.constant 0 : index
    %c0_4 = arith.constant 0 : index
    %3 = vector.load %arg3[%c0_3, %c0_4] : memref<2x256xf32, #tpu.memory_space<vmem>>, vector<2x256xf32>
    tpu.vector_store %arg3[%c0_3, %c0_4], %2 {strides = array<i32>} : memref<2x256xf32, #tpu.memory_space<vmem>>, vector<2x256xf32>,
    return
  }
  func.func @transform_0(%arg0: i32) -> (i32, i32) {
    %c0_i32 = arith.constant 0 : i32
    %c0_i32_0 = arith.constant 0 : i32
    return %arg0, %c0_i32 : i32, i32
  }
  func.func @transform_1(%arg0: i32) -> (i32, i32) {
    %c0_i32 = arith.constant 0 : i32
    %c0_i32_0 = arith.constant 0 : i32
    %c0_i32_1 = arith.constant 0 : i32
    return %c0_i32, %c0_i32_0 : i32, i32
  }
  func.func @transform_2(%arg0: i32) -> (i32, i32) {
    %c0_i32 = arith.constant 0 : i32
    %c0_i32_0 = arith.constant 0 : i32
    return %arg0, %c0_i32 : i32, i32
  }
}

</mosaic_0001>

<bundles_post_ra>
// kernel: tpu_custom_call.1
= control target key start
LH: loop header
LB: loop body
LE: loop exit
PB: predicated region body
PF: predicated region fallthrough
CT: control target
= control target key end

     0   :  { %7 = vsyncpa [#allocation3], 0  ;;  %s288_s0 = inlined_call_operand.hbm [shape: f32[2,136], index: 0, kind: input, shape index: {}]   ;;  %s289_s1 = inlined_call_operand.hbm [shape: f32[136,256], index: 1, kind: input, shape index: {}]   ;;  %s290_s2 = inlined_call_operand.hbm [shape: f32[2,256], index: 2, kind: output, shape index: {}]  }
   0x1   :  { %8 = vsyncpa [#allocation6], 0 }
   0x2   :  { %9 = vsyncpa [#allocation4], 0  ;;  %s259_s9 = smov [#allocation2]   ;;  %s260_s11 = smov [#allocation5]  }
   0x3   :  { %s16_s10 = sshll.u32 %s259_s9, 4  ;;  %s25_s12 = sshll.u32 %s260_s11, 4  ;;  %s17_s10 = int_to_ptr.vmem [resolvable:$true] %s16_s10  ;;  %s26_s12 = int_to_ptr.vmem [resolvable:$true] %s25_s12 }
   0x4   :  { %s201_s13 = scalar_lea.vmem %s17_s10, 64  ;;  %p206_p1 = scmp.lt.s32.totalorder %s17_s10, %s17_s10 }
   0x5   :  { %p202_p0 = scmp.ne.s32.totalorder %s17_s10, %s201_s13  ;;  %p207_p2 = scmp.lt.s32.totalorder %s201_s13, %s201_s13 }
   0x7   :  { %p208_p3 = por %p207_p2, %p206_p1 }
   0x9   :  { %p209_p4 = pnand %p208_p3, %p202_p0 }
   0xb   :  { %212 = shalt.err (!%p209_p4)
}
   0xc   :  { %19 = dma.hbm_to_vmem [thread:$0]  %s288_s0, 64, %s17_s10, [#allocation3]  }
   0xd   :  { %s221_s16 = scalar_lea.vmem %s26_s12, 4352  ;;  %p226_p6 = scmp.lt.s32.totalorder %s26_s12, %s26_s12 }
   0xe   :  { %p222_p5 = scmp.ne.s32.totalorder %s26_s12, %s221_s16  ;;  %p227_p7 = scmp.lt.s32.totalorder %s221_s16, %s221_s16 }
  0x10   :  { %p228_p8 = por %p227_p7, %p226_p6 }
  0x12   :  { %p229_p9 = pnand %p228_p8, %p222_p5 }
  0x14   :  { %232 = shalt.err (!%p229_p9)
}
  0x15   :  { %s261_s17 = smov 256   ;;  %s262_s18 = smov 16  }
  0x16   :  { %31 = dma.hbm_to_vmem [thread:$0]  %s289_s1, 4352, %s26_s12, [#allocation6], %s261_s17, %s261_s17, %s262_s18  }
  0x17   :  { %253 = dma.done.wait [#allocation3], 64  }
  0x18   :  { %254 = vsyncadd [#allocation3], 4294967232 }
  0x19   :  { %255 = dma.done.wait [#allocation6], 4352  }
  0x1a   :  { %256 = vsyncadd [#allocation6], 4294962944  ;;  %v70_v0 = vld [vmem:[#allocation5 + $0xf8] sm:$0xff]  ;;  %v69_v1 = vld [vmem:[#allocation5 + $0xf0] sm:$0xff]  ;;  %vm83_vm0 = vcmask 64512   ;;  %s263_s0 = smov [#allocation7]  }
  0x1b   :  { %v68_v2 = vld [vmem:[#allocation5 + $0xe8] sm:$0xff]  ;;  %86 = vmatprep.subr.mxu0 %v70_v0  ;;  %v67_v3 = vld [vmem:[#allocation5 + $0xe0] sm:$0xff]  ;;  %v66_v4 = vld [vmem:[#allocation5 + $0xd8] sm:$0xff]  ;;  %s175_s1 = sshll.u32 %s263_s0, 4  ;;  %s176_s1 = int_to_ptr.vmem [resolvable:$true] %s175_s1 }
  0x1c   :  { %87 = vmatpush1.msra.mxu0 %v69_v1  ;;  %v65_v5 = vld [vmem:[#allocation5 + $0xd0] sm:$0xff]  ;;  %v64_v6 = vld [vmem:[#allocation5 + $0xc8] sm:$0xff]  ;;  %v63_v7 = vld [vmem:[#allocation5 + $0xc0] sm:$0xff]  ;;  %s233_s21 = scalar_lea.vmem %s176_s1, 64  ;;  %p238_p11 = scmp.lt.s32.totalorder %s176_s1, %s176_s1 }
  0x1d   :  { %88 = vmatprep.subr.mxu0 %v68_v2  ;;  %v62_v8 = vld [vmem:[#allocation5 + $0xb8] sm:$0xff]  ;;  %v61_v9 = vld [vmem:[#allocation5 + $0xb0] sm:$0xff]  ;;  %v60_v10 = vld [vmem:[#allocation5 + $0xa8] sm:$0xff]  ;;  %p234_p10 = scmp.ne.s32.totalorder %s176_s1, %s233_s21  ;;  %p239_p12 = scmp.lt.s32.totalorder %s233_s21, %s233_s21 }
  0x1e   :  { %89 = vmatpush1.msra.mxu0 %v67_v3  ;;  %v59_v11 = vld [vmem:[#allocation5 + $0xa0] sm:$0xff]  ;;  %v58_v12 = vld [vmem:[#allocation5 + $0x98] sm:$0xff]  ;;  %v57_v13 = vld [vmem:[#allocation5 + $0x90] sm:$0xff] }
  0x1f   :  { %90 = vmatprep.subr.mxu0 %v66_v4  ;;  %v185_v14 = vld.sshfl [vmem:[#allocation2] sm:$0x33 pattern:$0x76325410]  ;;  %v56_v15 = vld [vmem:[#allocation5 + $0x88] sm:$0xff]  ;;  %v55_v17 = vld [vmem:[#allocation5 + $0x80] sm:$0xff]  ;;  %p240_p13 = por %p239_p12, %p238_p11 }
  0x20   :  { %91 = vmatpush1.msra.mxu0 %v65_v5  ;;  %v81_v16 = vcombine.high %v185_v14, %v185_v14  ;;  %v54_v18 = vld [vmem:[#allocation5 + $0x78] sm:$0xff]  ;;  %v53_v19 = vld [vmem:[#allocation5 + $0x70] sm:$0xff]  ;;  %v52_v20 = vld [vmem:[#allocation5 + $0x68] sm:$0xff] }
  0x21   :  { %92 = vmatprep.subr.mxu0 %v64_v6  ;;  %v51_v21 = vld [vmem:[#allocation5 + $0x60] sm:$0xff]  ;;  %v50_v22 = vld [vmem:[#allocation5 + $0x58] sm:$0xff]  ;;  %v49_v23 = vld [vmem:[#allocation5 + $0x50] sm:$0xff]  ;;  %p241_p0 = pnand %p240_p13, %p234_p10 }
  0x22   :  { %93 = vmatpush1.msra.mxu0 %v63_v7  ;;  %186 = vmatprep.mubr.msk.f32.mxu0 %vm83_vm0, %v81_v16  ;;  %v48_v24 = vld [vmem:[#allocation5 + $0x48] sm:$0xff]  ;;  %v47_v25 = vld [vmem:[#allocation5 + $0x40] sm:$0xff]  ;;  %v46_v26 = vld [vmem:[#allocation5 + $0x38] sm:$0xff] }
  0x23   :  { %94 = vmatprep.subr.mxu0 %v62_v8  ;;  %v45_v27 = vld [vmem:[#allocation5 + $0x30] sm:$0xff]  ;;  %v44_v28 = vld [vmem:[#allocation5 + $0x28] sm:$0xff]  ;;  %v43_v29 = vld [vmem:[#allocation5 + $0x20] sm:$0xff] }
  0x24   :  { %95 = vmatpush1.msra.mxu0 %v61_v9  ;;  %v42_v30 = vld [vmem:[#allocation5 + $0x18] sm:$0xff]  ;;  %v41_v31 = vld [vmem:[#allocation5 + $0x10] sm:$0xff]  ;;  %v40_v32 = vld [vmem:[#allocation5 + $0x8] sm:$0xff] }
  0x25   :  { %96 = vmatprep.subr.mxu0 %v60_v10  ;;  %v39_v33 = vld [vmem:[#allocation5] sm:$0xff]  ;;  %v72_v34 = vld [vmem:[#allocation5 + $0x108] sm:$0xff] }
  0x26   :  { %97 = vmatpush1.msra.mxu0 %v59_v11  ;;  %v71_v35 = vld [vmem:[#allocation5 + $0x100] sm:$0xff] }
  0x27   :  { %98 = vmatprep.subr.mxu0 %v58_v12 }
  0x28   :  { %99 = vmatpush1.msra.mxu0 %v57_v13 }
  0x29   :  { %100 = vmatprep.subr.mxu0 %v56_v15 }
  0x2a   :  { %101 = vmatpush1.msra.mxu0 %v55_v17 }
  0x2b   :  { %102 = vmatprep.subr.mxu0 %v54_v18 }
  0x2c   :  { %103 = vmatpush1.msra.mxu0 %v53_v19 }
  0x2d   :  { %104 = vmatprep.subr.mxu0 %v52_v20 }
  0x2e   :  { %105 = vmatpush1.msra.mxu0 %v51_v21 }
  0x2f   :  { %106 = vmatprep.subr.mxu0 %v50_v22 }
  0x30   :  { %107 = vmatpush1.msra.mxu0 %v49_v23 }
  0x31   :  { %108 = vmatprep.subr.mxu0 %v48_v24 }
  0x32   :  { %109 = vmatpush1.msra.mxu0 %v47_v25 }
  0x33   :  { %110 = vmatprep.subr.mxu0 %v46_v26 }
  0x34   :  { %111 = vmatpush1.msra.mxu0 %v45_v27 }
  0x35   :  { %112 = vmatprep.subr.mxu0 %v44_v28 }
  0x36   :  { %113 = vmatpush1.msra.mxu0 %v43_v29 }
  0x37   :  { %114 = vmatprep.subr.mxu0 %v42_v30 }
  0x38   :  { %115 = vmatpush1.msra.mxu0 %v41_v31 }
  0x39   :  { %116 = vmatprep.subr.mxu0 %v40_v32 }
  0x3a   :  { %117 = vmatpush1.msra.mxu0 %v39_v33 }
  0x3b   :  { %148 = vmatprep.subr.mxu0 %v72_v34 }
  0x3c   :  { %149 = vmatpush2.msra.mxu0 %v71_v35 }
  0x3d   :  { %151 = vmatmul.mubr.f32.vlgmr.msra.gmra.mxu0 %v185_v14 }
  0xfd   :  { %v152_v36 = vpop.f32.mrf.mxu0 }
  0xff   :  { %v154_v37 = vpop.f32.mrf.mxu0 }
 0x100   :  { %v159_v38 = vcombine.low %v152_v36, %v154_v37 }
 0x102   :  { %187 = vst.sshfl [vmem:[#allocation7] sm:$0x33 pattern:$0x76325410] %v159_v38 }
 0x103   :  { %244 = shalt.err (!%p241_p0)
}
 0x104   :  { %178 = dma.vmem_to_hbm [thread:$0]  %s176_s1, 64, %s290_s2, [#allocation4]  }
 0x105   :  { %257 = dma.done.wait [#allocation4], 64  }
 0x106   :  { %258 = vsyncadd [#allocation4], 4294967232 }
 0x107   :  { %182 = vsyncpa [#allocation3], 1 }
 0x108   :  { %183 = vsyncpa [#allocation6], 1 }
 0x109   :  { %184 = vsyncpa [#allocation4], 1 }

</bundles_post_ra>
